<compile_context>
chip_gen: v6e
topology: v6e:2x2x1
jax: 0.10.0
libtpu: 0.0.40
codegen_flags: <defaults>
</compile_context>

<pallas_src>
import jax
import jax.numpy as jnp
from jax.experimental import pallas as pl
from jax.experimental.pallas import tpu as pltpu


def dag_mlp_kernel(xt_ref, w1t_ref, b1t_ref, w2t_ref, b2t_ref, recont_ref):
    """One batch tile (columns = batch samples); all V per-variable MLPs fused.

    xt_ref:     (V, b_tile)  bf16  x^T, batch on the 128-lane axis
    w1t_ref:    (V*H, V)     bf16  adjacency-folded first-layer weights (transposed)
    b1t_ref:    (V*H, 1)     f32
    w2t_ref:    (V, V*H)     bf16  block-diagonal second layer (transposed)
    b2t_ref:    (V, 1)       f32
    recont_ref: (V, b_tile)  f32   recon^T
    """
    # hid^T[i*H+h, b] = relu( sum_j adj[j,i]*W1_i[h,j]*x[b,j] + b1[i,h] )
    hid = jnp.dot(w1t_ref[...], xt_ref[...], preferred_element_type=jnp.float32)
    hid = jnp.maximum(hid + b1t_ref[...], 0.0)                     # (V*H, b_tile)

    # recon^T[k, b] = sum_h W2_k[h] * hid^T[k*H+h, b] + b2[k]
    recon = jnp.dot(w2t_ref[...], hid.astype(jnp.bfloat16),
                    preferred_element_type=jnp.float32) + b2t_ref[...]
    recont_ref[...] = recon.astype(recont_ref.dtype)


def dag_forward(x, logits, gdelta, temperature, w1, b1, w2, b2, b_tile=None):
    """x:(B,V) f32, logits:(V,V), gdelta:(V,V) = g1-g0 Gumbel noise, w1:(V,H,V),
    b1:(V,H), w2:(V,H), b2:(1,V).
    Returns (reconstructed (B,V) f32, adjacency (V,V) f32)."""
    B, V = x.shape
    H = w1.shape[1]
    VH = V * H

    # ---- adjacency + folded weights: tiny & batch-independent -> plain JAX ---
    inv_tau = 1.0 / jnp.asarray(temperature, jnp.float32)
    soft = jax.nn.sigmoid((2.0 * logits + gdelta) * inv_tau)
    adjacency = soft * (1.0 - jnp.eye(V, dtype=jnp.float32))            # (V, V)

    # weff^T[i*H+h, j] = adjacency[j, i] * w1[i, h, j]   (parents mask folded in)
    w1t = w1.reshape(VH, V)                                             # (V*H, V)
    adj_rep = jnp.repeat(adjacency.T, H, axis=0)                        # (V*H, V)
    weff_t = (w1t * adj_rep).astype(jnp.bfloat16)                       # (V*H, V)
    b1_t = b1.reshape(VH, 1).astype(jnp.float32)                        # (V*H, 1)
    # w2^T_block[k, i*H+h] = w2[i, h] * (i == k)   (all second layers, block-diag)
    w2_t = (jnp.eye(V, dtype=jnp.float32)[:, :, None] * w2[None, :, :]) \
        .reshape(V, VH).astype(jnp.bfloat16)                            # (V, V*H)
    b2_t = b2.reshape(V, 1).astype(jnp.float32)                         # (V, 1)

    # Lane-dense batched input: batch on the lane axis, bf16 (halves x HBM read).
    xt = x.T.astype(jnp.bfloat16)                                       # (V, B)

    # ---- batch tiling ---------------------------------------------------------
    if b_tile is None:
        b_tile = 4096                                   # review: 2048-4096 default
    if B >= 256:
        # v7x: keep >=2 grid steps so dimension_semantics=("parallel",) can use
        # both TensorCores (single-TC chips are unaffected).
        half = ((B + 1) // 2 + 127) // 128 * 128
        b_tile = min(b_tile, half)
    if b_tile >= B:
        b_tile = B                                      # single full-width block
    else:
        b_tile = max(128, (b_tile // 128) * 128)        # 128-lane alignment
        if b_tile >= B:
            b_tile = B
    grid = (pl.cdiv(B, b_tile),)

    recon_t = pl.pallas_call(
        dag_mlp_kernel,
        out_shape=jax.ShapeDtypeStruct((V, B), jnp.float32),
        grid=grid,
        in_specs=[
            pl.BlockSpec((V, b_tile), lambda i: (0, i)),   # x^T  : batch-tiled
            pl.BlockSpec((VH, V), lambda i: (0, 0)),       # weff^T : resident
            pl.BlockSpec((VH, 1), lambda i: (0, 0)),       # b1^T   : resident
            pl.BlockSpec((V, VH), lambda i: (0, 0)),       # w2^T   : resident
            pl.BlockSpec((V, 1), lambda i: (0, 0)),        # b2^T   : resident
        ],
        out_specs=pl.BlockSpec((V, b_tile), lambda i: (0, i)),
        compiler_params=pltpu.CompilerParams(
            dimension_semantics=("parallel",)),            # both TCs on v7x
    )(xt, weff_t, b1_t, w2_t, b2_t)

    return recon_t.T, adjacency


def _reference_forward(x, logits, gdelta, temperature, w1, b1, w2, b2):
    """Pure-JAX f32 reference following the PyTorch per-variable loop exactly."""
    V = x.shape[1]
    soft = jax.nn.sigmoid((2.0 * logits + gdelta) / temperature)
    adj = soft * (1.0 - jnp.eye(V, dtype=jnp.float32))
    cols = []
    for i in range(V):
        masked = x * adj[:, i][None, :]
        h = jnp.maximum(masked @ w1[i].T + b1[i][None, :], 0.0)
        cols.append(h @ w2[i][:, None] + b2[0, i])
    return jnp.concatenate(cols, axis=1), adj


if __name__ == "__main__":
    key = jax.random.PRNGKey(0)
    B, V, H = 16, 8, 16  # batch, num_variables, hidden_dim (small demo shapes)

    ks = jax.random.split(key, 7)
    x = jax.random.normal(ks[0], (B, V), jnp.float32)

    # Deterministic "parameters" (mirror torch init shapes / scales).
    logits = 0.1 * jax.random.normal(ks[1], (V, V), jnp.float32)   # adjacency_logits
    temperature = jnp.float32(1.0)
    bound1 = 1.0 / (V ** 0.5)
    w1 = jax.random.uniform(ks[2], (V, H, V), jnp.float32, minval=-bound1, maxval=bound1)
    b1 = jax.random.uniform(ks[3], (V, H), jnp.float32, minval=-bound1, maxval=bound1)
    bound2 = 1.0 / (H ** 0.5)
    w2 = jax.random.uniform(ks[4], (V, H), jnp.float32, minval=-bound2, maxval=bound2)
    b2 = jax.random.uniform(ks[5], (1, V), jnp.float32, minval=-bound2, maxval=bound2)

    # Gumbel noise for the soft (hard=False) gumbel_softmax path, sampled once.
    gumbel = jax.random.gumbel(ks[6], (V, V, 2), jnp.float32)
    gdelta = gumbel[..., 1] - gumbel[..., 0]

    # --- small-batch run (single grid step) -----------------------------------
    recon, adj = dag_forward(x, logits, gdelta, temperature, w1, b1, w2, b2)
    jax.block_until_ready((recon, adj))

    recon_ref, adj_ref = _reference_forward(x, logits, gdelta, temperature, w1, b1, w2, b2)
    assert jnp.allclose(adj, adj_ref, atol=1e-6, rtol=1e-6), "adjacency mismatch"
    # bf16 MXU operands with f32 accumulation -> bf16-appropriate tolerance.
    assert jnp.allclose(recon, recon_ref, atol=5e-2, rtol=5e-2), "reconstruction mismatch"

    # --- larger batch: exercises the multi-step parallel grid + padded tail ----
    B2 = 640
    x2 = jax.random.normal(jax.random.PRNGKey(1), (B2, V), jnp.float32)
    recon2, adj2 = dag_forward(x2, logits, gdelta, temperature, w1, b1, w2, b2)
    jax.block_until_ready((recon2, adj2))
    recon2_ref, _ = _reference_forward(x2, logits, gdelta, temperature, w1, b1, w2, b2)
    assert jnp.allclose(recon2, recon2_ref, atol=5e-2, rtol=5e-2), "tiled reconstruction mismatch"

    print("KERNEL_OK")
</pallas_src>

<mosaic_0001>
module attributes {stable_mosaic.version = 11 : i64} {
  func.func @dag_mlp_kernel(%arg0: i32, %arg1: memref<8x16xbf16, #tpu.memory_space<vmem>>, %arg2: memref<128x8xbf16, #tpu.memory_space<vmem>>, %arg3: memref<128x1xf32, #tpu.memory_space<vmem>>, %arg4: memref<8x128xbf16, #tpu.memory_space<vmem>>, %arg5: memref<8x1xf32, #tpu.memory_space<vmem>>, %arg6: memref<8x16xf32, #tpu.memory_space<vmem>>) attributes {dimension_semantics = [#tpu.dimension_semantics<parallel>], iteration_bounds = array<i64: 1>, scalar_prefetch = 0 : i64, scratch_operands = 0 : i64, tpu.core_type = #tpu.core_type<tc>, window_params = [{transform_indices = @transform_0, window_bounds = array<i64: 8, 16>}, {pipeline_mode = #tpu.pipeline_mode<synchronous>, transform_indices = @transform_1, window_bounds = array<i64: 128, 8>}, {pipeline_mode = #tpu.pipeline_mode<synchronous>, transform_indices = @transform_2, window_bounds = array<i64: 128, 1>}, {pipeline_mode = #tpu.pipeline_mode<synchronous>, transform_indices = @transform_3, window_bounds = array<i64: 8, 128>}, {pipeline_mode = #tpu.pipeline_mode<synchronous>, transform_indices = @transform_4, window_bounds = array<i64: 8, 1>}, {transform_indices = @transform_5, window_bounds = array<i64: 8, 16>}]} {
    %c0 = arith.constant 0 : index
    %c0_0 = arith.constant 0 : index
    %0 = vector.load %arg2[%c0, %c0_0] : memref<128x8xbf16, #tpu.memory_space<vmem>>, vector<128x8xbf16>
    %c0_1 = arith.constant 0 : index
    %c0_2 = arith.constant 0 : index
    %1 = vector.load %arg1[%c0_1, %c0_2] : memref<8x16xbf16, #tpu.memory_space<vmem>>, vector<8x16xbf16>
    %cst = arith.constant dense<0.000000e+00> : vector<128x16xf32>
    %2 = tpu.matmul %0, %1, %cst {dimension_numbers = #tpu.dot_dimension_numbers<[1], [0], [0], [1], [0, 0, 1, 1], [], []>} : vector<128x8xbf16>, vector<8x16xbf16>, vector<128x16xf32> -> vector<128x16xf32>
    %c0_3 = arith.constant 0 : index
    %c0_4 = arith.constant 0 : index
    %3 = vector.load %arg3[%c0_3, %c0_4] : memref<128x1xf32, #tpu.memory_space<vmem>>, vector<128x1xf32>
    %4 = vector.broadcast %3 : vector<128x1xf32> to vector<128x16xf32>
    %5 = arith.addf %2, %4 : vector<128x16xf32>
    %cst_5 = arith.constant 0.000000e+00 : f32
    %6 = vector.broadcast %cst_5 : f32 to vector<128x16xf32>
    %7 = arith.maximumf %5, %6 : vector<128x16xf32>
    %c0_6 = arith.constant 0 : index
    %c0_7 = arith.constant 0 : index
    %8 = vector.load %arg4[%c0_6, %c0_7] : memref<8x128xbf16, #tpu.memory_space<vmem>>, vector<8x128xbf16>
    %9 = arith.truncf %7 : vector<128x16xf32> to vector<128x16xbf16>
    %cst_8 = arith.constant dense<0.000000e+00> : vector<8x16xf32>
    %10 = tpu.matmul %8, %9, %cst_8 {dimension_numbers = #tpu.dot_dimension_numbers<[1], [0], [0], [1], [0, 0, 1, 1], [], []>} : vector<8x128xbf16>, vector<128x16xbf16>, vector<8x16xf32> -> vector<8x16xf32>
    %c0_9 = arith.constant 0 : index
    %c0_10 = arith.constant 0 : index
    %11 = vector.load %arg5[%c0_9, %c0_10] : memref<8x1xf32, #tpu.memory_space<vmem>>, vector<8x1xf32>
    %12 = vector.broadcast %11 : vector<8x1xf32> to vector<8x16xf32>
    %13 = arith.addf %10, %12 : vector<8x16xf32>
    %c0_11 = arith.constant 0 : index
    %c0_12 = arith.constant 0 : index
    %14 = vector.load %arg6[%c0_11, %c0_12] : memref<8x16xf32, #tpu.memory_space<vmem>>, vector<8x16xf32>
    tpu.vector_store %arg6[%c0_11, %c0_12], %13 {strides = array<i32>} : memref<8x16xf32, #tpu.memory_space<vmem>>, vector<8x16xf32>,
    return
  }
  func.func @transform_0(%arg0: i32) -> (i32, i32) {
    %c0_i32 = arith.constant 0 : i32
    %c0_i32_0 = arith.constant 0 : i32
    return %c0_i32, %arg0 : i32, i32
  }
  func.func @transform_1(%arg0: i32) -> (i32, i32) {
    %c0_i32 = arith.constant 0 : i32
    %c0_i32_0 = arith.constant 0 : i32
    %c0_i32_1 = arith.constant 0 : i32
    return %c0_i32, %c0_i32_0 : i32, i32
  }
  func.func @transform_2(%arg0: i32) -> (i32, i32) {
    %c0_i32 = arith.constant 0 : i32
    %c0_i32_0 = arith.constant 0 : i32
    %c0_i32_1 = arith.constant 0 : i32
    return %c0_i32, %c0_i32_0 : i32, i32
  }
  func.func @transform_3(%arg0: i32) -> (i32, i32) {
    %c0_i32 = arith.constant 0 : i32
    %c0_i32_0 = arith.constant 0 : i32
    %c0_i32_1 = arith.constant 0 : i32
    return %c0_i32, %c0_i32_0 : i32, i32
  }
  func.func @transform_4(%arg0: i32) -> (i32, i32) {
    %c0_i32 = arith.constant 0 : i32
    %c0_i32_0 = arith.constant 0 : i32
    %c0_i32_1 = arith.constant 0 : i32
    return %c0_i32, %c0_i32_0 : i32, i32
  }
  func.func @transform_5(%arg0: i32) -> (i32, i32) {
    %c0_i32 = arith.constant 0 : i32
    %c0_i32_0 = arith.constant 0 : i32
    return %c0_i32, %arg0 : i32, i32
  }
}

</mosaic_0001>

<bundles_post_ra>
// kernel: tpu_custom_call.1
= control target key start
LH: loop header
LB: loop body
LE: loop exit
PB: predicated region body
PF: predicated region fallthrough
CT: control target
= control target key end

     0   :  { %vm200_vm0 = vcmask 1043456   ;;  %vm175_vm1 = vcmask 64512   ;;  %v497_v5 = vmov 0   ;;  %s641_s0 = inlined_call_operand.vmem [shape: bf16[8,16], index: 0, kind: input, shape index: {}]   ;;  %s642_s1 = inlined_call_operand.vmem [shape: bf16[128,8], index: 1, kind: input, shape index: {}]   ;;  %s643_s2 = inlined_call_operand.vmem [shape: f32[128,1], index: 2, kind: input, shape index: {}]   ;;  %s644_s3 = inlined_call_operand.vmem [shape: bf16[8,128], index: 3, kind: input, shape index: {}]   ;;  %s645_s4 = inlined_call_operand.vmem [shape: f32[8,1], index: 4, kind: input, shape index: {}]   ;;  %s646_s5 = inlined_call_operand.hbm [shape: f32[8,16], index: 5, kind: output, shape index: {}]  }
   0x1   :  { %v38_v0 = vld [vmem:[%s641_s0] sm:$0xf]  ;;  %v468_v3 = vld [vmem:[%s642_s1 + $0x8] sm:$0xff]   ;;  %v469_v4 = vld [vmem:[%s642_s1 + $0x10] sm:$0xff]   ;;  %465 = vset.pattern.permute.xlu0 %v497_v5  ;;  %466 = vset.pattern.permute.xlu1 %v497_v5 }
   0x2   :  { %v467_v1 = vld [vmem:[%s642_s1] sm:$0xff]   ;;  %460 = vmatprep.subr.msk.bf16.mxu0 %vm200_vm0, %v38_v0  ;;  %v202_v2 = vsel %vm200_vm0, %v38_v0, 0  ;;  %v53_v6 = vld [vmem:[%s643_s2 + $0x70] sm:$0xff]  ;;  %v470_v7 = vld [vmem:[%s642_s1 + $0x18] sm:$0xff]  }
   0x3   :  { %423 = vmatpush3.bf16.msra.mxu0 %v202_v2  ;;  %424 = vmatprep.mubr.msk.bf16.mxu0 %vm175_vm1, %v467_v1  ;;  %v51_v8 = vld [vmem:[%s643_s2 + $0x60] sm:$0xff]  ;;  %v54_v10 = vld [vmem:[%s643_s2 + $0x78] sm:$0xff]  ;;  %v52_v11 = vld [vmem:[%s643_s2 + $0x68] sm:$0xff] }
   0x4   :  { %127 = vperm.xlu0 %465, %v53_v6   ;;  %v471_v9 = vld [vmem:[%s642_s1 + $0x20] sm:$0xff]   ;;  %117 = vperm.xlu1 %466, %v51_v8   ;;  %v49_v12 = vld [vmem:[%s643_s2 + $0x50] sm:$0xff] }
   0x6   :  { %425 = vmatmul.mubr.msk.bf16.vlgmr.msra.gmra.mxu0 %vm175_vm1, %v468_v3 }
   0x7   :  { %428 = vmatprep.mubr.msk.bf16.mxu0 %vm175_vm1, %v469_v4 }
   0x8   :  { %132 = vperm.xlu0 %465, %v54_v10   ;;  %122 = vperm.xlu1 %466, %v52_v11  }
   0xe   :  { %429 = vmatmul.mubr.msk.bf16.gmra.mxu0 %vm175_vm1, %v470_v7 }
   0xf   :  { %432 = vmatprep.mubr.msk.bf16.mxu0 %vm175_vm1, %v471_v9 }
  0x10   :  { %10 = vsyncpa [#allocation3], 0  ;;  %v50_v13 = vld [vmem:[%s643_s2 + $0x58] sm:$0xff]  ;;  %v472_v14 = vld [vmem:[%s642_s1 + $0x28] sm:$0xff]   ;;  %107 = vperm.xlu0 %465, %v49_v12   ;;  %v498_v28 = vmov 0.0   ;;  %vm499_vm2 = vmmov 0  }
  0x11   :  { %v473_v15 = vld [vmem:[%s642_s1 + $0x30] sm:$0xff]   ;;  %112 = vperm.xlu1 %466, %v50_v13   ;;  %v47_v16 = vld [vmem:[%s643_s2 + $0x40] sm:$0xff]  ;;  %v48_v17 = vld [vmem:[%s643_s2 + $0x48] sm:$0xff]  ;;  %440 = vmatprep.subr.bf16.mxu1 %v498_v28  ;;  %s500_s17 = smov [#allocation2]   ;;  %vm372_vm3 = vcmask 130048  }
  0x12   :  { %v45_v18 = vld [vmem:[%s643_s2 + $0x30] sm:$0xff]  ;;  %v46_v19 = vld [vmem:[%s643_s2 + $0x38] sm:$0xff]  ;;  %v43_v21 = vld [vmem:[%s643_s2 + $0x20] sm:$0xff]  ;;  %456 = vmatprep.mubr.msk.bf16.mxu1 %vm499_vm2, %v498_v28  ;;  %s380_s18 = sshll.u32 %s500_s17, 4  ;;  %s381_s18 = int_to_ptr.vmem [resolvable:$true] %s380_s18 }
  0x13   :  { %v474_v20 = vld [vmem:[%s642_s1 + $0x38] sm:$0xff]   ;;  %v44_v22 = vld [vmem:[%s643_s2 + $0x28] sm:$0xff]  ;;  %v41_v23 = vld [vmem:[%s643_s2 + $0x10] sm:$0xff]  ;;  %s475_s19 = scalar_lea.vmem %s381_s18, 128  ;;  %p480_p1 = scmp.lt.s32.totalorder %s381_s18, %s381_s18 }
  0x14   :  { %97 = vperm.xlu0 %465, %v47_v16   ;;  %v42_v24 = vld [vmem:[%s643_s2 + $0x18] sm:$0xff]  ;;  %v39_v25 = vld [vmem:[%s643_s2] sm:$0xff]  ;;  %v40_v26 = vld [vmem:[%s643_s2 + $0x8] sm:$0xff]  ;;  %p476_p0 = scmp.ne.s32.totalorder %s381_s18, %s475_s19  ;;  %p481_p2 = scmp.lt.s32.totalorder %s475_s19, %s475_s19 }
  0x15   :  { %102 = vperm.xlu1 %466, %v48_v17   ;;  %v326_v27 = vld [vmem:[%s645_s4] sm:$0xff] }
  0x16   :  { %433 = vmatmul.mubr.msk.bf16.gmra.mxu0 %vm175_vm1, %v472_v14  ;;  %p482_p3 = por %p481_p2, %p480_p1 }
  0x17   :  { %436 = vmatprep.mubr.msk.bf16.mxu0 %vm175_vm1, %v473_v15 }
  0x18   :  { %87 = vperm.xlu0 %465, %v45_v18   ;;  %p483_p4 = pnand %p482_p3, %p476_p0 }
  0x19   :  { %92 = vperm.xlu1 %466, %v46_v19  }
  0x1c   :  { %77 = vperm.xlu0 %465, %v43_v21  }
  0x1d   :  { %82 = vperm.xlu1 %466, %v44_v22  }
  0x1e   :  { %437 = vmatmul.mubr.msk.bf16.gmra.mxu0 %vm175_vm1, %v474_v20 }
  0x20   :  { %67 = vperm.xlu0 %465, %v41_v23  }
  0x21   :  { %72 = vperm.xlu1 %466, %v42_v24  }
  0x24   :  { %57 = vperm.xlu0 %465, %v39_v25  }
  0x25   :  { %62 = vperm.xlu1 %466, %v40_v26  }
  0x28   :  { %329 = vperm.xlu0 %465, %v326_v27  }
  0x7f   :  { %v118_v33 = vpop.permute.xlu1 %117  ;;  %v128_v35 = vpop.permute.xlu0 %127 }
  0x83   :  { %v123_v38 = vpop.permute.xlu1 %122  ;;  %v133_v40 = vpop.permute.xlu0 %132 }
  0x8b   :  { %v108_v45 = vpop.permute.xlu0 %107 }
  0x8c   :  { %v113_v43 = vpop.permute.xlu1 %112 }
  0x8f   :  { %v98_v51 = vpop.permute.xlu0 %97 }
  0x90   :  { %v103_v48 = vpop.permute.xlu1 %102 }
  0x93   :  { %v88_v63 = vpop.permute.xlu0 %87 }
  0x94   :  { %v93_v59 = vpop.permute.xlu1 %92 }
  0x97   :  { %v78_v8 = vpop.permute.xlu0 %77 }
  0x98   :  { %v83_v5 = vpop.permute.xlu1 %82 }
  0x9b   :  { %v68_v18 = vpop.permute.xlu0 %67 }
  0x9c   :  { %v73_v14 = vpop.permute.xlu1 %72 }
  0x9f   :  { %v58_v27 = vpop.permute.xlu0 %57 }
  0xa0   :  { %v63_v24 = vpop.permute.xlu1 %62 }
  0xc6   :  { %v619_v29 = vpop.f32.mrf.mxu0 }
  0xc7   :  { %v247_v25 = vadd.f32 %v619_v29, %v68_v18 }
  0xc8   :  { %v621_v30 = vpop.f32.mrf.mxu0 }
  0xca   :  { %v427_v31 = vpop.f32.mrf.mxu0 }
  0xcb   :  { %v250_v21 = vadd.f32 %v427_v31, %v73_v14 }
  0xcc   :  { %v623_v32 = vpop.f32.mrf.mxu0 }
  0xce   :  { %v430_v34 = vpop.f32.mrf.mxu0 }
  0xcf   :  { %v263_v12 = vadd.f32 %v430_v34, %v88_v63  ;;  %v242_v34 = vadd.f32 %v623_v32, %v63_v24  ;;  %v330_v32 = vpop.permute.xlu0 %329 }
  0xd0   :  { %v254_v36 = vpop.f32.mrf.mxu0 }
  0xd1   :  { %v307_v19 = vmax.f32 %v263_v12, 0.0  ;;  %v255_v20 = vadd.f32 %v254_v36, %v78_v8  ;;  %v239_v36 = vadd.f32 %v621_v30, %v58_v27 }
  0xd2   :  { %v431_v37 = vpop.f32.mrf.mxu0 }
  0xd3   :  { %v266_v9 = vadd.f32 %v431_v37, %v93_v59  ;;  %v305_v26 = vmax.f32 %v255_v20, 0.0  ;;  %v303_v37 = vmax.f32 %v247_v25, 0.0 }
  0xd4   :  { %v257_v39 = vpop.f32.mrf.mxu0 }
  0xd5   :  { %v308_v15 = vmax.f32 %v266_v9, 0.0  ;;  %v258_v16 = vadd.f32 %v257_v39, %v83_v5  ;;  %v301_v39 = vmax.f32 %v239_v36, 0.0 }
  0xd6   :  { %v434_v41 = vpop.f32.mrf.mxu0 }
  0xd7   :  { %v279_v0 = vadd.f32 %v434_v41, %v108_v45  ;;  %v321_v22 = vpack.c.bf16 %v308_v15, %v307_v19  ;;  %v306_v23 = vmax.f32 %v258_v16, 0.0 }
  0xd8   :  { %v270_v42 = vpop.f32.mrf.mxu0 }
  0xd9   :  { %v311_v6 = vmax.f32 %v279_v0, 0.0  ;;  %v271_v7 = vadd.f32 %v270_v42, %v98_v51 }
  0xda   :  { %v435_v44 = vpop.f32.mrf.mxu0 }
  0xdb   :  { %v282_v60 = vadd.f32 %v435_v44, %v113_v43  ;;  %v309_v13 = vmax.f32 %v271_v7, 0.0 }
  0xdc   :  { %v273_v46 = vpop.f32.mrf.mxu0 }
  0xdd   :  { %v312_v2 = vmax.f32 %v282_v60, 0.0  ;;  %v274_v3 = vadd.f32 %v273_v46, %v103_v48 }
  0xde   :  { %v438_v47 = vpop.f32.mrf.mxu0 }
  0xdf   :  { %v295_v50 = vadd.f32 %v438_v47, %v128_v35  ;;  %v323_v10 = vpack.c.bf16 %v312_v2, %v311_v6  ;;  %v310_v11 = vmax.f32 %v274_v3, 0.0  ;;  %v320_v35 = vpack.c.bf16 %v306_v23, %v305_v26 }
  0xe0   :  { %v286_v49 = vpop.f32.mrf.mxu0 }
  0xe1   :  { %v315_v55 = vmax.f32 %v295_v50, 0.0  ;;  %v287_v56 = vadd.f32 %v286_v49, %v118_v33  ;;  %v322_v17 = vpack.c.bf16 %v310_v11, %v309_v13  ;;  %v304_v33 = vmax.f32 %v250_v21, 0.0 }
  0xe2   :  { %v439_v52 = vpop.f32.mrf.mxu0 }
  0xe3   :  { %v298_v53 = vadd.f32 %v439_v52, %v133_v40  ;;  %v313_v1 = vmax.f32 %v287_v56, 0.0  ;;  %v319_v31 = vpack.c.bf16 %v304_v33, %v303_v37  ;;  %v317_v40 = vld [vmem:[%s644_s3] sm:$0xf] }
  0xe4   :  { %v289_v54 = vpop.f32.mrf.mxu0 }
  0xe5   :  { %v316_v57 = vmax.f32 %v298_v53, 0.0  ;;  %v290_v58 = vadd.f32 %v289_v54, %v123_v38  ;;  %v302_v38 = vmax.f32 %v242_v34, 0.0 }
  0xe7   :  { %v314_v61 = vmax.f32 %v290_v58, 0.0  ;;  %v325_v62 = vpack.c.bf16 %v316_v57, %v315_v55  ;;  %v318_v29 = vpack.c.bf16 %v302_v38, %v301_v39 }
  0xe9   :  { %441 = vmatpush3.bf16.msra.mxu1 %v325_v62  ;;  %v324_v4 = vpack.c.bf16 %v314_v61, %v313_v1 }
  0xea   :  { %442 = vmatprep.subr.bf16.mxu1 %v498_v28 }
  0xed   :  { %443 = vmatpush3.bf16.msra.mxu1 %v324_v4 }
  0xee   :  { %444 = vmatprep.subr.bf16.mxu1 %v498_v28 }
  0xf1   :  { %445 = vmatpush3.bf16.msra.mxu1 %v323_v10 }
  0xf2   :  { %446 = vmatprep.subr.bf16.mxu1 %v498_v28 }
  0xf5   :  { %447 = vmatpush3.bf16.msra.mxu1 %v322_v17 }
  0xf6   :  { %448 = vmatprep.subr.bf16.mxu1 %v498_v28 }
  0xf9   :  { %449 = vmatpush3.bf16.msra.mxu1 %v321_v22 }
  0xfa   :  { %450 = vmatprep.subr.bf16.mxu1 %v498_v28 }
  0xfd   :  { %451 = vmatpush3.bf16.msra.mxu1 %v320_v35 }
  0xfe   :  { %452 = vmatprep.subr.bf16.mxu1 %v498_v28 }
 0x101   :  { %453 = vmatpush3.bf16.msra.mxu1 %v319_v31 }
 0x102   :  { %454 = vmatprep.subr.bf16.mxu1 %v498_v28 }
 0x105   :  { %455 = vmatpush3.bf16.msra.mxu1 %v318_v29 }
 0x108   :  { %457 = vmatmul.mubr.bf16.vlgmr.msra.gmra.mxu1 %v317_v40 }
 0x1c8   :  { %v366_v30 = vpop.f32.mrf.mxu1 }
 0x1c9   :  { %v367_v41 = vadd.f32 %v366_v30, %v330_v32 }
 0x1ca   :  { %v458_v42 = vpop.f32.mrf.mxu1 }
 0x1cb   :  { %373 = vst.msk [vmem:[#allocation2] sm:$0xff] %vm372_vm3, %v367_v41 }
 0x1cc   :  { %v369_v43 = vpop.f32.mrf.mxu1 }
 0x1cd   :  { %486 = shalt.err (!%p483_p4)
}
 0x1ce   :  { %383 = dma.vmem_to_hbm [thread:$0]  %s381_s18, 128, %s646_s5, [#allocation3]   ;;  %v459_v28 = vpop.f32.mrf.mxu1 }
 0x1cf   :  { %495 = dma.done.wait [#allocation3], 128  }
 0x1d0   :  { %496 = vsyncadd [#allocation3], 4294967168 }
 0x1d1   :  { %387 = vsyncpa [#allocation3], 1 }

</bundles_post_ra>
